<compile_context>
chip_gen: v7x
topology: tpu7x:2x2x1
jax: 0.10.0
libtpu: 0.0.40
codegen_flags: <defaults>
</compile_context>

<pallas_src>
from collections import namedtuple
import functools

import jax
import jax.numpy as jnp
import numpy as np
from jax import lax
from jax.experimental import pallas as pl
from jax.experimental.pallas import tpu as pltpu

Outputs = namedtuple("Outputs", ["last_hidden_state", "pooler_output", "hidden_states"])


def _vmem_limit_bytes():
    # Half of physical VMEM, capped at 64 MiB: v7x (64 MiB) -> 32 MiB,
    # v5e/v6e (128 MiB) -> 64 MiB.  Falls back to a safe default.
    try:
        cap = int(pltpu.get_tpu_info().vmem_capacity_bytes)
    except Exception:
        cap = 128 * 1024 * 1024
    return int(min(cap // 2, 64 * 1024 * 1024))


_VMEM_LIMIT = _vmem_limit_bytes()
_BLOCK_BUDGET = _VMEM_LIMIT // 3      # budget for double-buffered streamed inputs
_GATHER_ROWS = 8                      # concurrent row-gather DMAs per grid step


def _pick_tiles(B, S, H, n_hidden, itemsize):
    """Pick (batch_tile, seq_tile) for the streamed masked-average kernels."""

    def rows_for(st):
        # double-buffered hidden chunks + the lane-padded (st, 1) mask block
        per_row = n_hidden * 2 * st * H * itemsize + 2 * st * 128 * 4
        return max(1, _BLOCK_BUDGET // per_row)

    st = S if S <= 256 else 256                 # full S, or a multiple-of-8 chunk
    while rows_for(st) < min(B, 8) and st > 8:  # shrink chunk to keep >=8 batch rows
        st = max(8, ((st // 2) // 8) * 8)

    bt = min(B, rows_for(st))
    if B <= 8:
        bt = B                                  # out-block 2nd-minor dim must be ==B or %8==0
    else:
        if B >= 16:
            bt = min(bt, pl.cdiv(B, 2))         # >=2 'parallel' steps for v7x megacore
        bt = max(8, (bt // 8) * 8)              # dense (8,128)-aligned output stores
    return bt, st


# ----------------------------- kernels ------------------------------------ #

def _row_gather_kernel(ids_ref, h_hbm, out_ref, buf, sems, *, batch, rows):
    # ids_ref: SMEM [B] int32, token index per batch row (already wrapped into [0, S)).
    # h_hbm:   [B, S, H] left in HBM (memory_space=pl.ANY).
    # out_ref: [rows, H] output block; buf: [rows, H] VMEM scratch; sems: DMA sems.
    base = pl.program_id(0) * rows
    for r in range(rows):                            # static unroll: `rows` concurrent DMAs
        b = jnp.minimum(base + r, batch - 1)         # clamp edge block (extra rows clipped)
        pltpu.make_async_copy(h_hbm.at[b, ids_ref[b]], buf.at[r], sems.at[r]).start()
    for r in range(rows):
        pltpu.make_async_copy(h_hbm.at[0, 0], buf.at[r], sems.at[r]).wait()
    out_ref[...] = buf[...]


def _masked_sum_kernel(mask_ref, h_ref, out_ref, acc_ref, *, seq_len, seq_tile):
    # mask_ref: [bt, st, 1] f32, pre-scaled by 1/sum(mask) per row (sublane-major).
    # h_ref:    [bt, st, H]  one sequence chunk.
    # out_ref:  [bt, H]      written on the last sequence chunk only.
    # acc_ref:  [bt, H] f32  accumulator scratch.
    s = pl.program_id(1)

    @pl.when(s == 0)
    def _():
        acc_ref[...] = jnp.zeros_like(acc_ref)

    m = mask_ref[...]                                # [bt, st, 1]
    h = h_ref[...].astype(jnp.float32)               # per-chunk upcast
    prod = m * h                                     # lane-broadcast of m over H
    if seq_len % seq_tile != 0:                      # zero padded rows of the edge chunk
        rows = lax.broadcasted_iota(jnp.int32, (1, seq_tile, 1), 1) + s * seq_tile
        prod = jnp.where(rows < seq_len, prod, 0.0)
    acc_ref[...] += jnp.sum(prod, axis=1)

    @pl.when(s == pl.num_programs(1) - 1)
    def _():
        out_ref[...] = acc_ref[...].astype(out_ref.dtype)


def _masked_sum2_kernel(mask_ref, ha_ref, hb_ref, out_ref, acc_ref, *, seq_len, seq_tile):
    # Average of two layers: the two masked sums are accumulated separately,
    # so no (ha+hb)/2 full-sequence temporary is ever formed.
    s = pl.program_id(1)

    @pl.when(s == 0)
    def _():
        acc_ref[...] = jnp.zeros_like(acc_ref)

    m = mask_ref[...]                                # [bt, st, 1]
    pa = m * ha_ref[...].astype(jnp.float32)
    pb = m * hb_ref[...].astype(jnp.float32)
    if seq_len % seq_tile != 0:
        rows = lax.broadcasted_iota(jnp.int32, (1, seq_tile, 1), 1) + s * seq_tile
        valid = rows < seq_len
        pa = jnp.where(valid, pa, 0.0)
        pb = jnp.where(valid, pb, 0.0)
    acc_ref[...] += jnp.sum(pa, axis=1)
    acc_ref[...] += jnp.sum(pb, axis=1)

    @pl.when(s == pl.num_programs(1) - 1)
    def _():
        out_ref[...] = (acc_ref[...] * 0.5).astype(out_ref.dtype)


# ----------------------------- wrappers ------------------------------------ #

def _row_gather_call(ids, hidden):
    # ids: int32 [B] token index per row, already in [0, S).
    B, S, H = hidden.shape
    rows = min(B, _GATHER_ROWS)
    grid = (pl.cdiv(B, rows),)
    kernel = functools.partial(_row_gather_kernel, batch=B, rows=rows)
    return pl.pallas_call(
        kernel,
        out_shape=jax.ShapeDtypeStruct((B, H), hidden.dtype),
        grid_spec=pltpu.PrefetchScalarGridSpec(
            num_scalar_prefetch=1,
            grid=grid,
            in_specs=[pl.BlockSpec(memory_space=pl.ANY)],
            out_specs=pl.BlockSpec((rows, H), lambda b, ids_ref: (b, 0)),
            scratch_shapes=[pltpu.VMEM((rows, H), hidden.dtype),
                            pltpu.SemaphoreType.DMA((rows,))],
        ),
        compiler_params=pltpu.CompilerParams(dimension_semantics=("parallel",)),
    )(ids, hidden)


def _masked_avg_call(scaled_mask, hidden):
    # scaled_mask: [B, S, 1] f32, already divided by sum(mask) per row.
    B, S, H = hidden.shape
    bt, st = _pick_tiles(B, S, H, 1, hidden.dtype.itemsize)
    grid = (pl.cdiv(B, bt), pl.cdiv(S, st))
    kernel = functools.partial(_masked_sum_kernel, seq_len=S, seq_tile=st)
    bytes_acc = (B * S * H + B * H) * hidden.dtype.itemsize + B * S * 4
    return pl.pallas_call(
        kernel,
        out_shape=jax.ShapeDtypeStruct((B, H), hidden.dtype),
        grid_spec=pltpu.PrefetchScalarGridSpec(
            num_scalar_prefetch=0,
            grid=grid,
            in_specs=[pl.BlockSpec((bt, st, 1), lambda b, s: (b, s, 0)),
                      pl.BlockSpec((bt, st, H), lambda b, s: (b, s, 0))],
            out_specs=pl.BlockSpec((bt, H), lambda b, s: (b, 0)),
            scratch_shapes=[pltpu.VMEM((bt, H), jnp.float32)],
        ),
        compiler_params=pltpu.CompilerParams(
            dimension_semantics=("parallel", "arbitrary"),
            vmem_limit_bytes=_VMEM_LIMIT),
        cost_estimate=pl.CostEstimate(flops=2 * B * S * H, transcendentals=0,
                                      bytes_accessed=int(bytes_acc)),
    )(scaled_mask, hidden)


def _masked_avg2_call(scaled_mask, hidden_a, hidden_b):
    B, S, H = hidden_a.shape
    bt, st = _pick_tiles(B, S, H, 2, hidden_a.dtype.itemsize)
    grid = (pl.cdiv(B, bt), pl.cdiv(S, st))
    kernel = functools.partial(_masked_sum2_kernel, seq_len=S, seq_tile=st)
    bytes_acc = (2 * B * S * H + B * H) * hidden_a.dtype.itemsize + B * S * 4
    return pl.pallas_call(
        kernel,
        out_shape=jax.ShapeDtypeStruct((B, H), hidden_a.dtype),
        grid_spec=pltpu.PrefetchScalarGridSpec(
            num_scalar_prefetch=0,
            grid=grid,
            in_specs=[pl.BlockSpec((bt, st, 1), lambda b, s: (b, s, 0)),
                      pl.BlockSpec((bt, st, H), lambda b, s: (b, s, 0)),
                      pl.BlockSpec((bt, st, H), lambda b, s: (b, s, 0))],
            out_specs=pl.BlockSpec((bt, H), lambda b, s: (b, 0)),
            scratch_shapes=[pltpu.VMEM((bt, H), jnp.float32)],
        ),
        compiler_params=pltpu.CompilerParams(
            dimension_semantics=("parallel", "arbitrary"),
            vmem_limit_bytes=_VMEM_LIMIT),
        cost_estimate=pl.CostEstimate(flops=4 * B * S * H, transcendentals=0,
                                      bytes_accessed=int(bytes_acc)),
    )(scaled_mask, hidden_a, hidden_b)


class Pooler:
    """JAX/Pallas port of simcse.models.Pooler (parameter-free)."""

    POOLER_TYPES = ["cls", "mask", "cls_before_pooler", "avg", "avg_top2", "avg_first_last"]

    def __init__(self, pooler_type):
        assert pooler_type in self.POOLER_TYPES, "unrecognized pooling type %s" % pooler_type
        self.pooler_type = pooler_type

    def __call__(self, attention_mask, outputs):
        last_hidden = outputs.last_hidden_state
        hidden_states = outputs.hidden_states
        B, S, H = last_hidden.shape

        if self.pooler_type in ("cls_before_pooler", "cls"):
            ids = jnp.zeros((B,), jnp.int32)           # CLS token = row 0
            return _row_gather_call(ids, last_hidden)

        if self.pooler_type == "mask":
            # mod S reproduces PyTorch's wrap-around semantics for negative ids.
            ids = jnp.mod(attention_mask.astype(jnp.int32).sum(axis=1) - 3, S)
            return _row_gather_call(ids, last_hidden)

        # Fold 1/sum(mask) into the mask once in the wrapper (tiny [B,S] XLA op),
        # and present it sublane-major [B, S, 1] so the kernel's broadcast over H
        # is a cheap lane-broadcast.
        m = attention_mask.astype(jnp.float32)
        den = m.sum(axis=-1)                           # [B]
        scaled_mask = (m / den[:, None])[:, :, None]   # [B, S, 1]

        if self.pooler_type == "avg":
            return _masked_avg_call(scaled_mask, last_hidden)
        if self.pooler_type == "avg_first_last":
            return _masked_avg2_call(scaled_mask, hidden_states[0], hidden_states[-1])
        if self.pooler_type == "avg_top2":
            return _masked_avg2_call(scaled_mask, hidden_states[-1], hidden_states[-2])
        raise NotImplementedError


# ----------------------------- reference ----------------------------------- #

def _reference(pooler_type, attention_mask, outputs):
    last_hidden = outputs.last_hidden_state
    hidden_states = outputs.hidden_states
    mask = attention_mask.astype(jnp.float32)
    B, S, _ = last_hidden.shape
    if pooler_type in ["cls_before_pooler", "cls"]:
        return last_hidden[:, 0]
    elif pooler_type == "mask":
        ids = jnp.mod(mask.sum(1).astype(jnp.int32) - 3, S)
        return last_hidden[jnp.arange(B), ids]
    elif pooler_type == "avg":
        return (last_hidden * mask[:, :, None]).sum(1) / mask.sum(-1)[:, None]
    elif pooler_type == "avg_first_last":
        h = (hidden_states[0] + hidden_states[-1]) / 2.0
        return (h * mask[:, :, None]).sum(1) / mask.sum(-1)[:, None]
    elif pooler_type == "avg_top2":
        h = (hidden_states[-1] + hidden_states[-2]) / 2.0
        return (h * mask[:, :, None]).sum(1) / mask.sum(-1)[:, None]


# ------------------------------ main ---------------------------------------- #

if __name__ == "__main__":
    B, S, H, L = 4, 16, 128, 3  # batch, seq, hidden, num hidden_states layers

    key = jax.random.PRNGKey(0)
    keys = jax.random.split(key, L + 1)
    hidden_states = tuple(
        jax.random.normal(keys[i], (B, S, H), dtype=jnp.float32) for i in range(L)
    )
    last_hidden = hidden_states[-1]
    pooler_output = jax.random.normal(keys[L], (B, H), dtype=jnp.float32)

    # valid-token mask rows with 16, 6, 9, 3 valid tokens (rest padded)
    valid = [16, 6, 9, 3]
    attention_mask = jnp.array(
        [[1] * v + [0] * (S - v) for v in valid], dtype=jnp.int32
    )

    outputs = Outputs(
        last_hidden_state=last_hidden,
        pooler_output=pooler_output,
        hidden_states=hidden_states,
    )

    for ptype in ["cls", "cls_before_pooler", "mask", "avg", "avg_first_last", "avg_top2"]:
        pooler = Pooler(ptype)
        got = jax.block_until_ready(pooler(attention_mask, outputs))
        want = _reference(ptype, attention_mask, outputs)
        assert got.shape == (B, H), (ptype, got.shape)
        np.testing.assert_allclose(np.asarray(got), np.asarray(want), rtol=1e-5, atol=1e-5)

    print("KERNEL_OK")
</pallas_src>

<mosaic_0001>
module attributes {stable_mosaic.version = 11 : i64} {
  func.func @_row_gather_kernel(%arg0: i32, %arg1: memref<4xi32, #tpu.memory_space<smem>>, %arg2: memref<4x16x128xf32, #tpu.memory_space<any>>, %arg3: memref<4x128xf32, #tpu.memory_space<vmem>>, %arg4: memref<4x128xf32, #tpu.memory_space<vmem>>, %arg5: memref<4x!tpu.dma_semaphore, #tpu.memory_space<semaphore_mem>>) attributes {dimension_semantics = [#tpu.dimension_semantics<parallel>], iteration_bounds = array<i64: 1>, scalar_prefetch = 1 : i64, scratch_operands = 2 : i64, tpu.core_type = #tpu.core_type<tc>, window_params = [{}, {transform_indices = @transform_1, window_bounds = array<i64: 4, 128>}]} {
    %c4_i32 = arith.constant 4 : i32
    %0 = arith.muli %arg0, %c4_i32 : i32
    %c0_i32 = arith.constant 0 : i32
    %1 = arith.addi %0, %c0_i32 : i32
    %c3_i32 = arith.constant 3 : i32
    %2 = arith.minsi %1, %c3_i32 : i32
    %3 = arith.index_cast %2 : i32 to index
    %4 = memref.load %arg1[%3] : memref<4xi32, #tpu.memory_space<smem>>
    %c0_i32_0 = arith.constant 0 : i32
    %c0_i32_1 = arith.constant 0 : i32
    %c0_i32_2 = arith.constant 0 : i32
    %5 = tpu.memref_slice %arg2[%2, %4, %c0_i32_2] : memref<4x16x128xf32, #tpu.memory_space<any>> -> memref<1x1x128xf32, #tpu.memory_space<any>>
    %6 = tpu.memref_squeeze %5 : memref<1x1x128xf32, #tpu.memory_space<any>> -> memref<128xf32, #tpu.memory_space<any>>
    %c0_i32_3 = arith.constant 0 : i32
    %7 = tpu.memref_slice %arg4[%c0_i32_0, %c0_i32_3] : memref<4x128xf32, #tpu.memory_space<vmem>> -> memref<1x128xf32, #tpu.memory_space<vmem>>
    %8 = tpu.memref_squeeze %7 : memref<1x128xf32, #tpu.memory_space<vmem>> -> memref<128xf32, #tpu.memory_space<vmem>>
    %9 = tpu.memref_slice %arg5[%c0_i32_1] : memref<4x!tpu.dma_semaphore, #tpu.memory_space<semaphore_mem>> -> memref<1x!tpu.dma_semaphore, #tpu.memory_space<semaphore_mem>>
    %10 = tpu.memref_squeeze %9 : memref<1x!tpu.dma_semaphore, #tpu.memory_space<semaphore_mem>> -> memref<!tpu.dma_semaphore, #tpu.memory_space<semaphore_mem>>
    tpu.enqueue_dma source(%6 : memref<128xf32, #tpu.memory_space<any>>) target(%8 : memref<128xf32, #tpu.memory_space<vmem>>) target_semaphore(%10 : memref<!tpu.dma_semaphore, #tpu.memory_space<semaphore_mem>>)
    %c1_i32 = arith.constant 1 : i32
    %11 = arith.addi %0, %c1_i32 : i32
    %c3_i32_4 = arith.constant 3 : i32
    %12 = arith.minsi %11, %c3_i32_4 : i32
    %13 = arith.index_cast %12 : i32 to index
    %14 = memref.load %arg1[%13] : memref<4xi32, #tpu.memory_space<smem>>
    %c1_i32_5 = arith.constant 1 : i32
    %c1_i32_6 = arith.constant 1 : i32
    %c0_i32_7 = arith.constant 0 : i32
    %15 = tpu.memref_slice %arg2[%12, %14, %c0_i32_7] : memref<4x16x128xf32, #tpu.memory_space<any>> -> memref<1x1x128xf32, #tpu.memory_space<any>>
    %16 = tpu.memref_squeeze %15 : memref<1x1x128xf32, #tpu.memory_space<any>> -> memref<128xf32, #tpu.memory_space<any>>
    %c0_i32_8 = arith.constant 0 : i32
    %17 = tpu.memref_slice %arg4[%c1_i32_5, %c0_i32_8] : memref<4x128xf32, #tpu.memory_space<vmem>> -> memref<1x128xf32, #tpu.memory_space<vmem>>
    %18 = tpu.memref_squeeze %17 : memref<1x128xf32, #tpu.memory_space<vmem>> -> memref<128xf32, #tpu.memory_space<vmem>>
    %19 = tpu.memref_slice %arg5[%c1_i32_6] : memref<4x!tpu.dma_semaphore, #tpu.memory_space<semaphore_mem>> -> memref<1x!tpu.dma_semaphore, #tpu.memory_space<semaphore_mem>>
    %20 = tpu.memref_squeeze %19 : memref<1x!tpu.dma_semaphore, #tpu.memory_space<semaphore_mem>> -> memref<!tpu.dma_semaphore, #tpu.memory_space<semaphore_mem>>
    tpu.enqueue_dma source(%16 : memref<128xf32, #tpu.memory_space<any>>) target(%18 : memref<128xf32, #tpu.memory_space<vmem>>) target_semaphore(%20 : memref<!tpu.dma_semaphore, #tpu.memory_space<semaphore_mem>>)
    %c2_i32 = arith.constant 2 : i32
    %21 = arith.addi %0, %c2_i32 : i32
    %c3_i32_9 = arith.constant 3 : i32
    %22 = arith.minsi %21, %c3_i32_9 : i32
    %23 = arith.index_cast %22 : i32 to index
    %24 = memref.load %arg1[%23] : memref<4xi32, #tpu.memory_space<smem>>
    %c2_i32_10 = arith.constant 2 : i32
    %c2_i32_11 = arith.constant 2 : i32
    %c0_i32_12 = arith.constant 0 : i32
    %25 = tpu.memref_slice %arg2[%22, %24, %c0_i32_12] : memref<4x16x128xf32, #tpu.memory_space<any>> -> memref<1x1x128xf32, #tpu.memory_space<any>>
    %26 = tpu.memref_squeeze %25 : memref<1x1x128xf32, #tpu.memory_space<any>> -> memref<128xf32, #tpu.memory_space<any>>
    %c0_i32_13 = arith.constant 0 : i32
    %27 = tpu.memref_slice %arg4[%c2_i32_10, %c0_i32_13] : memref<4x128xf32, #tpu.memory_space<vmem>> -> memref<1x128xf32, #tpu.memory_space<vmem>>
    %28 = tpu.memref_squeeze %27 : memref<1x128xf32, #tpu.memory_space<vmem>> -> memref<128xf32, #tpu.memory_space<vmem>>
    %29 = tpu.memref_slice %arg5[%c2_i32_11] : memref<4x!tpu.dma_semaphore, #tpu.memory_space<semaphore_mem>> -> memref<1x!tpu.dma_semaphore, #tpu.memory_space<semaphore_mem>>
    %30 = tpu.memref_squeeze %29 : memref<1x!tpu.dma_semaphore, #tpu.memory_space<semaphore_mem>> -> memref<!tpu.dma_semaphore, #tpu.memory_space<semaphore_mem>>
    tpu.enqueue_dma source(%26 : memref<128xf32, #tpu.memory_space<any>>) target(%28 : memref<128xf32, #tpu.memory_space<vmem>>) target_semaphore(%30 : memref<!tpu.dma_semaphore, #tpu.memory_space<semaphore_mem>>)
    %c3_i32_14 = arith.constant 3 : i32
    %31 = arith.addi %0, %c3_i32_14 : i32
    %c3_i32_15 = arith.constant 3 : i32
    %32 = arith.minsi %31, %c3_i32_15 : i32
    %33 = arith.index_cast %32 : i32 to index
    %34 = memref.load %arg1[%33] : memref<4xi32, #tpu.memory_space<smem>>
    %c3_i32_16 = arith.constant 3 : i32
    %c3_i32_17 = arith.constant 3 : i32
    %c0_i32_18 = arith.constant 0 : i32
    %35 = tpu.memref_slice %arg2[%32, %34, %c0_i32_18] : memref<4x16x128xf32, #tpu.memory_space<any>> -> memref<1x1x128xf32, #tpu.memory_space<any>>
    %36 = tpu.memref_squeeze %35 : memref<1x1x128xf32, #tpu.memory_space<any>> -> memref<128xf32, #tpu.memory_space<any>>
    %c0_i32_19 = arith.constant 0 : i32
    %37 = tpu.memref_slice %arg4[%c3_i32_16, %c0_i32_19] : memref<4x128xf32, #tpu.memory_space<vmem>> -> memref<1x128xf32, #tpu.memory_space<vmem>>
    %38 = tpu.memref_squeeze %37 : memref<1x128xf32, #tpu.memory_space<vmem>> -> memref<128xf32, #tpu.memory_space<vmem>>
    %39 = tpu.memref_slice %arg5[%c3_i32_17] : memref<4x!tpu.dma_semaphore, #tpu.memory_space<semaphore_mem>> -> memref<1x!tpu.dma_semaphore, #tpu.memory_space<semaphore_mem>>
    %40 = tpu.memref_squeeze %39 : memref<1x!tpu.dma_semaphore, #tpu.memory_space<semaphore_mem>> -> memref<!tpu.dma_semaphore, #tpu.memory_space<semaphore_mem>>
    tpu.enqueue_dma source(%36 : memref<128xf32, #tpu.memory_space<any>>) target(%38 : memref<128xf32, #tpu.memory_space<vmem>>) target_semaphore(%40 : memref<!tpu.dma_semaphore, #tpu.memory_space<semaphore_mem>>)
    %c0_i32_20 = arith.constant 0 : i32
    %c0_i32_21 = arith.constant 0 : i32
    %c0_i32_22 = arith.constant 0 : i32
    %c0_i32_23 = arith.constant 0 : i32
    %c0_i32_24 = arith.constant 0 : i32
    %41 = tpu.memref_slice %arg2[%c0_i32_20, %c0_i32_21, %c0_i32_24] : memref<4x16x128xf32, #tpu.memory_space<any>> -> memref<1x1x128xf32, #tpu.memory_space<any>>
    %42 = tpu.memref_squeeze %41 : memref<1x1x128xf32, #tpu.memory_space<any>> -> memref<128xf32, #tpu.memory_space<any>>
    %c0_i32_25 = arith.constant 0 : i32
    %43 = tpu.memref_slice %arg4[%c0_i32_22, %c0_i32_25] : memref<4x128xf32, #tpu.memory_space<vmem>> -> memref<1x128xf32, #tpu.memory_space<vmem>>
    %44 = tpu.memref_squeeze %43 : memref<1x128xf32, #tpu.memory_space<vmem>> -> memref<128xf32, #tpu.memory_space<vmem>>
    %45 = tpu.memref_slice %arg5[%c0_i32_23] : memref<4x!tpu.dma_semaphore, #tpu.memory_space<semaphore_mem>> -> memref<1x!tpu.dma_semaphore, #tpu.memory_space<semaphore_mem>>
    %46 = tpu.memref_squeeze %45 : memref<1x!tpu.dma_semaphore, #tpu.memory_space<semaphore_mem>> -> memref<!tpu.dma_semaphore, #tpu.memory_space<semaphore_mem>>
    tpu.wait_dma2 semaphore(%46 : memref<!tpu.dma_semaphore, #tpu.memory_space<semaphore_mem>>) src(%42 : memref<128xf32, #tpu.memory_space<any>>) dst(%44 : memref<128xf32, #tpu.memory_space<vmem>>)
    %c0_i32_26 = arith.constant 0 : i32
    %c0_i32_27 = arith.constant 0 : i32
    %c1_i32_28 = arith.constant 1 : i32
    %c1_i32_29 = arith.constant 1 : i32
    %c0_i32_30 = arith.constant 0 : i32
    %47 = tpu.memref_slice %arg2[%c0_i32_26, %c0_i32_27, %c0_i32_30] : memref<4x16x128xf32, #tpu.memory_space<any>> -> memref<1x1x128xf32, #tpu.memory_space<any>>
    %48 = tpu.memref_squeeze %47 : memref<1x1x128xf32, #tpu.memory_space<any>> -> memref<128xf32, #tpu.memory_space<any>>
    %c0_i32_31 = arith.constant 0 : i32
    %49 = tpu.memref_slice %arg4[%c1_i32_28, %c0_i32_31] : memref<4x128xf32, #tpu.memory_space<vmem>> -> memref<1x128xf32, #tpu.memory_space<vmem>>
    %50 = tpu.memref_squeeze %49 : memref<1x128xf32, #tpu.memory_space<vmem>> -> memref<128xf32, #tpu.memory_space<vmem>>
    %51 = tpu.memref_slice %arg5[%c1_i32_29] : memref<4x!tpu.dma_semaphore, #tpu.memory_space<semaphore_mem>> -> memref<1x!tpu.dma_semaphore, #tpu.memory_space<semaphore_mem>>
    %52 = tpu.memref_squeeze %51 : memref<1x!tpu.dma_semaphore, #tpu.memory_space<semaphore_mem>> -> memref<!tpu.dma_semaphore, #tpu.memory_space<semaphore_mem>>
    tpu.wait_dma2 semaphore(%52 : memref<!tpu.dma_semaphore, #tpu.memory_space<semaphore_mem>>) src(%48 : memref<128xf32, #tpu.memory_space<any>>) dst(%50 : memref<128xf32, #tpu.memory_space<vmem>>)
    %c0_i32_32 = arith.constant 0 : i32
    %c0_i32_33 = arith.constant 0 : i32
    %c2_i32_34 = arith.constant 2 : i32
    %c2_i32_35 = arith.constant 2 : i32
    %c0_i32_36 = arith.constant 0 : i32
    %53 = tpu.memref_slice %arg2[%c0_i32_32, %c0_i32_33, %c0_i32_36] : memref<4x16x128xf32, #tpu.memory_space<any>> -> memref<1x1x128xf32, #tpu.memory_space<any>>
    %54 = tpu.memref_squeeze %53 : memref<1x1x128xf32, #tpu.memory_space<any>> -> memref<128xf32, #tpu.memory_space<any>>
    %c0_i32_37 = arith.constant 0 : i32
    %55 = tpu.memref_slice %arg4[%c2_i32_34, %c0_i32_37] : memref<4x128xf32, #tpu.memory_space<vmem>> -> memref<1x128xf32, #tpu.memory_space<vmem>>
    %56 = tpu.memref_squeeze %55 : memref<1x128xf32, #tpu.memory_space<vmem>> -> memref<128xf32, #tpu.memory_space<vmem>>
    %57 = tpu.memref_slice %arg5[%c2_i32_35] : memref<4x!tpu.dma_semaphore, #tpu.memory_space<semaphore_mem>> -> memref<1x!tpu.dma_semaphore, #tpu.memory_space<semaphore_mem>>
    %58 = tpu.memref_squeeze %57 : memref<1x!tpu.dma_semaphore, #tpu.memory_space<semaphore_mem>> -> memref<!tpu.dma_semaphore, #tpu.memory_space<semaphore_mem>>
    tpu.wait_dma2 semaphore(%58 : memref<!tpu.dma_semaphore, #tpu.memory_space<semaphore_mem>>) src(%54 : memref<128xf32, #tpu.memory_space<any>>) dst(%56 : memref<128xf32, #tpu.memory_space<vmem>>)
    %c0_i32_38 = arith.constant 0 : i32
    %c0_i32_39 = arith.constant 0 : i32
    %c3_i32_40 = arith.constant 3 : i32
    %c3_i32_41 = arith.constant 3 : i32
    %c0_i32_42 = arith.constant 0 : i32
    %59 = tpu.memref_slice %arg2[%c0_i32_38, %c0_i32_39, %c0_i32_42] : memref<4x16x128xf32, #tpu.memory_space<any>> -> memref<1x1x128xf32, #tpu.memory_space<any>>
    %60 = tpu.memref_squeeze %59 : memref<1x1x128xf32, #tpu.memory_space<any>> -> memref<128xf32, #tpu.memory_space<any>>
    %c0_i32_43 = arith.constant 0 : i32
    %61 = tpu.memref_slice %arg4[%c3_i32_40, %c0_i32_43] : memref<4x128xf32, #tpu.memory_space<vmem>> -> memref<1x128xf32, #tpu.memory_space<vmem>>
    %62 = tpu.memref_squeeze %61 : memref<1x128xf32, #tpu.memory_space<vmem>> -> memref<128xf32, #tpu.memory_space<vmem>>
    %63 = tpu.memref_slice %arg5[%c3_i32_41] : memref<4x!tpu.dma_semaphore, #tpu.memory_space<semaphore_mem>> -> memref<1x!tpu.dma_semaphore, #tpu.memory_space<semaphore_mem>>
    %64 = tpu.memref_squeeze %63 : memref<1x!tpu.dma_semaphore, #tpu.memory_space<semaphore_mem>> -> memref<!tpu.dma_semaphore, #tpu.memory_space<semaphore_mem>>
    tpu.wait_dma2 semaphore(%64 : memref<!tpu.dma_semaphore, #tpu.memory_space<semaphore_mem>>) src(%60 : memref<128xf32, #tpu.memory_space<any>>) dst(%62 : memref<128xf32, #tpu.memory_space<vmem>>)
    %c0 = arith.constant 0 : index
    %c0_44 = arith.constant 0 : index
    %65 = vector.load %arg4[%c0, %c0_44] : memref<4x128xf32, #tpu.memory_space<vmem>>, vector<4x128xf32>
    %c0_45 = arith.constant 0 : index
    %c0_46 = arith.constant 0 : index
    %66 = vector.load %arg3[%c0_45, %c0_46] : memref<4x128xf32, #tpu.memory_space<vmem>>, vector<4x128xf32>
    tpu.vector_store %arg3[%c0_45, %c0_46], %65 {strides = array<i32>} : memref<4x128xf32, #tpu.memory_space<vmem>>, vector<4x128xf32>,
    return
  }
  func.func @transform_1(%arg0: i32, %arg1: memref<4xi32, #tpu.memory_space<smem>>) -> (i32, i32) {
    %c0_i32 = arith.constant 0 : i32
    %c0_i32_0 = arith.constant 0 : i32
    return %arg0, %c0_i32 : i32, i32
  }
}

</mosaic_0001>

<bundles_post_ra>
// kernel: tpu_custom_call.1
= control target key start
LH: loop header
LB: loop body
LE: loop exit
PB: predicated region body
PF: predicated region fallthrough
CT: control target
= control target key end

     0   :  { %s440_s0 = inlined_call_operand.hbm [shape: s32[4], index: 0, kind: input, shape index: {}]   ;;  %s441_s1 = inlined_call_operand.hbm [shape: f32[4,16,128], index: 1, kind: input, shape index: {}]   ;;  %s442_s2 = inlined_call_operand.hbm [shape: f32[4,128], index: 2, kind: output, shape index: {}]  }
   0x1   :  { %s184_s11 = scalar_lea.hbm %s440_s0, 16 }
   0x2   :  { %p185_p0 = scmp.ne.s32.totalorder %s440_s0, %s184_s11  ;;  %p188_p1 = scmp.lt.u32.totalorder %s184_s11, %s440_s0 }
   0x4   :  { %p190_p2 = pnand %p188_p1, %p185_p0 }
   0x6   :  { %193 = shalt.err (!%p190_p2)  }
   0x7   :  { %s324_s16 = smov [#allocation5]  }
   0x8   :  { %8 = dma.hbm_to_smem %s440_s0, 16, %s324_s16, [#allocation4] }
   0x9   :  { %312 = dma.done.wait [#allocation4], 16 }
   0xa   :  { %313 = vsyncadd [#allocation4], 4294967280 }
   0xb   :  { %10 = sfence }
   0xc   :  { %11 = vsyncpa [#allocation7], 0  ;;  %s15_s19 = sld [smem:[#allocation5]]  ;;  %s325_s20 = smov [#allocation2]  }
   0xd   :  { %s27_s21 = sshll.u32 %s325_s20, 4  ;;  %s357_s22 = sld [smem:[#allocation5 + $0x1]]  ;;  %s359_s21 = int_to_ptr.vmem [resolvable:$true] %s27_s21 }
   0xe   :  { %s326_s23 = smov [#allocation2 + $0x1]   ;;  %s361_s25 = sld [smem:[#allocation5 + $0x2]] }
   0xf   :  { %s48_s24 = sshll.u32 %s326_s23, 4  ;;  %s327_s26 = smov [#allocation2 + $0x2]   ;;  %s363_s24 = int_to_ptr.vmem [resolvable:$true] %s48_s24 }
  0x10   :  { %s69_s0 = sshll.u32 %s327_s26, 4  ;;  %s365_s27 = sld [smem:[#allocation5 + $0x3]]  ;;  %s367_s0 = int_to_ptr.vmem [resolvable:$true] %s69_s0 }
  0x11   :  { %s376_s8 = scalar_lea.hbm %s441_s1, 1024 }
  0x12   :  { %s161_s28 = sshll.u32 %s15_s19, 4 }
  0x13   :  { %s19_s3 = scalar_lea.hbm %s441_s1, %s161_s28  ;;  %s172_s4 = sshll.u32 %s357_s22, 4 }
  0x14   :  { %s194_s5 = scalar_lea.hbm %s19_s3, 16  ;;  %p197_p4 = scmp.lt.u32.totalorder %s19_s3, %s441_s1 }
  0x15   :  { %p195_p3 = scmp.ne.s32.totalorder %s19_s3, %s194_s5  ;;  %p198_p5 = scmp.lt.u32.totalorder %s376_s8, %s194_s5 }
  0x16   :  { %p200_p7 = scmp.lt.u32.totalorder %s194_s5, %s19_s3 }
  0x17   :  { %p199_p6 = por %p198_p5, %p197_p4 }
  0x19   :  { %p201_p8 = por %p200_p7, %p199_p6 }
  0x1b   :  { %p202_p9 = pnand %p201_p8, %p195_p3 }
  0x1d   :  { %205 = shalt.err (!%p202_p9)  }
  0x1e   :  { %s206_s11 = scalar_lea.vmem %s359_s21, 16  ;;  %s385_s12 = scalar_lea.vmem %s359_s21, 64 }
  0x1f   :  { %p207_p10 = scmp.ne.s32.totalorder %s359_s21, %s206_s11  ;;  %p211_p11 = scmp.lt.s32.totalorder %s359_s21, %s359_s21 }
  0x20   :  { %p212_p12 = scmp.lt.s32.totalorder %s385_s12, %s206_s11 }
  0x22   :  { %p213_p13 = por %p212_p12, %p211_p11 }
  0x24   :  { %p214_p0 = pnand %p213_p13, %p207_p10 }
  0x26   :  { %217 = shalt.err (!%p214_p0)  }
  0x27   :  { %30 = dma.hbm_to_vmem [thread:$0]  %s19_s3, 16, %s359_s21, [#allocation3] }
  0x28   :  { %s173_s13 = sadd.s32 256, %s172_s4  ;;  %s174_s14 = sshll.u32 %s361_s25, 4 }
  0x29   :  { %s38_s17 = scalar_lea.hbm %s441_s1, %s173_s13  ;;  %s175_s18 = sadd.s32 512, %s174_s14 }
  0x2a   :  { %s218_s19 = scalar_lea.hbm %s38_s17, 16  ;;  %p221_p2 = scmp.lt.u32.totalorder %s38_s17, %s441_s1 }
  0x2b   :  { %p219_p1 = scmp.ne.s32.totalorder %s38_s17, %s218_s19  ;;  %p222_p3 = scmp.lt.u32.totalorder %s376_s8, %s218_s19 }
  0x2c   :  { %p224_p5 = scmp.lt.u32.totalorder %s218_s19, %s38_s17 }
  0x2d   :  { %p223_p4 = por %p222_p3, %p221_p2 }
  0x2f   :  { %p225_p6 = por %p224_p5, %p223_p4 }
  0x31   :  { %p226_p7 = pnand %p225_p6, %p219_p1 }
  0x33   :  { %229 = shalt.err (!%p226_p7)  }
  0x34   :  { %s230_s23 = scalar_lea.vmem %s363_s24, 16  ;;  %p235_p9 = scmp.lt.s32.totalorder %s363_s24, %s359_s21 }
  0x35   :  { %p231_p8 = scmp.ne.s32.totalorder %s363_s24, %s230_s23  ;;  %p236_p10 = scmp.lt.s32.totalorder %s385_s12, %s230_s23 }
  0x37   :  { %p237_p11 = por %p236_p10, %p235_p9 }
  0x39   :  { %p238_p12 = pnand %p237_p11, %p231_p8 }
  0x3b   :  { %241 = shalt.err (!%p238_p12)  }
  0x3c   :  { %51 = dma.hbm_to_vmem [thread:$0]  %s38_s17, 16, %s363_s24, [#allocation3 + $0x1] }
  0x3d   :  { %s59_s28 = scalar_lea.hbm %s441_s1, %s175_s18  ;;  %s176_s29 = sshll.u32 %s365_s27, 4 }
  0x3e   :  { %s242_s30 = scalar_lea.hbm %s59_s28, 16  ;;  %p245_p0 = scmp.lt.u32.totalorder %s59_s28, %s441_s1 }
  0x3f   :  { %p243_p13 = scmp.ne.s32.totalorder %s59_s28, %s242_s30  ;;  %p246_p1 = scmp.lt.u32.totalorder %s376_s8, %s242_s30 }
  0x40   :  { %p248_p3 = scmp.lt.u32.totalorder %s242_s30, %s59_s28 }
  0x41   :  { %p247_p2 = por %p246_p1, %p245_p0 }
  0x43   :  { %p249_p4 = por %p248_p3, %p247_p2 }
  0x45   :  { %p250_p5 = pnand %p249_p4, %p243_p13 }
  0x47   :  { %253 = shalt.err (!%p250_p5)  }
  0x48   :  { %s254_s24 = scalar_lea.vmem %s367_s0, 16  ;;  %p259_p7 = scmp.lt.s32.totalorder %s367_s0, %s359_s21 }
  0x49   :  { %p255_p6 = scmp.ne.s32.totalorder %s367_s0, %s254_s24  ;;  %p260_p8 = scmp.lt.s32.totalorder %s385_s12, %s254_s24 }
  0x4b   :  { %p261_p9 = por %p260_p8, %p259_p7 }
  0x4d   :  { %p262_p10 = pnand %p261_p9, %p255_p6 }
  0x4f   :  { %265 = shalt.err (!%p262_p10)  }
  0x50   :  { %72 = dma.hbm_to_vmem [thread:$0]  %s59_s28, 16, %s367_s0, [#allocation3 + $0x2] }
  0x51   :  { %s177_s27 = sadd.s32 768, %s176_s29  ;;  %s328_s9 = smov [#allocation2 + $0x3]  }
  0x52   :  { %s80_s7 = scalar_lea.hbm %s441_s1, %s177_s27  ;;  %s90_s10 = sshll.u32 %s328_s9, 4  ;;  %s91_s10 = int_to_ptr.vmem [resolvable:$true] %s90_s10 }
  0x53   :  { %s266_s11 = scalar_lea.hbm %s80_s7, 16  ;;  %p269_p12 = scmp.lt.u32.totalorder %s80_s7, %s441_s1 }
  0x54   :  { %p267_p11 = scmp.ne.s32.totalorder %s80_s7, %s266_s11  ;;  %p270_p13 = scmp.lt.u32.totalorder %s376_s8, %s266_s11 }
  0x55   :  { %p272_p1 = scmp.lt.u32.totalorder %s266_s11, %s80_s7 }
  0x56   :  { %p271_p0 = por %p270_p13, %p269_p12 }
  0x58   :  { %p273_p2 = por %p272_p1, %p271_p0 }
  0x5a   :  { %p274_p3 = pnand %p273_p2, %p267_p11 }
  0x5c   :  { %277 = shalt.err (!%p274_p3)  }
  0x5d   :  { %s278_s0 = scalar_lea.vmem %s91_s10, 16  ;;  %p283_p5 = scmp.lt.s32.totalorder %s91_s10, %s359_s21 }
  0x5e   :  { %p279_p4 = scmp.ne.s32.totalorder %s91_s10, %s278_s0  ;;  %p284_p6 = scmp.lt.s32.totalorder %s385_s12, %s278_s0 }
  0x60   :  { %p285_p7 = por %p284_p6, %p283_p5 }
  0x62   :  { %p286_p8 = pnand %p285_p7, %p279_p4 }
  0x64   :  { %289 = shalt.err (!%p286_p8)  }
  0x65   :  { %93 = dma.hbm_to_vmem [thread:$0]  %s80_s7, 16, %s91_s10, [#allocation3 + $0x3] }
  0x66   :  { %314 = dma.done.wait [#allocation3], 16 }
  0x67   :  { %315 = vsyncadd [#allocation3], 4294967280 }
  0x68   :  { %316 = dma.done.wait [#allocation3 + $0x1], 16 }
  0x69   :  { %317 = vsyncadd [#allocation3 + $0x1], 4294967280 }
  0x6a   :  { %318 = dma.done.wait [#allocation3 + $0x2], 16 }
  0x6b   :  { %319 = vsyncadd [#allocation3 + $0x2], 4294967280 }
  0x6c   :  { %320 = dma.done.wait [#allocation3 + $0x3], 16 }
  0x6d   :  { %321 = vsyncadd [#allocation3 + $0x3], 4294967280  ;;  %s329_s1 = smov [#allocation6]   ;;  %v102_v0 = vld [vmem:[#allocation2] sm:$0xf] }
  0x6e   :  { %s110_s8 = sshll.u32 %s329_s1, 4  ;;  %103 = vst [vmem:[#allocation6] sm:$0xf] %v102_v0  ;;  %s111_s8 = int_to_ptr.vmem [resolvable:$true] %s110_s8 }
  0x6f   :  { %s290_s15 = scalar_lea.vmem %s111_s8, 64  ;;  %p295_p10 = scmp.lt.s32.totalorder %s111_s8, %s111_s8 }
  0x70   :  { %p291_p9 = scmp.ne.s32.totalorder %s111_s8, %s290_s15  ;;  %p296_p11 = scmp.lt.s32.totalorder %s290_s15, %s290_s15 }
  0x72   :  { %p297_p12 = por %p296_p11, %p295_p10 }
  0x74   :  { %p298_p13 = pnand %p297_p12, %p291_p9 }
  0x76   :  { %301 = shalt.err (!%p298_p13)
}
  0x77   :  { %s302_s16 = scalar_lea.hbm %s442_s2, 64 }
  0x78   :  { %p303_p0 = scmp.ne.s32.totalorder %s442_s2, %s302_s16  ;;  %p306_p1 = scmp.lt.u32.totalorder %s302_s16, %s442_s2 }
  0x7a   :  { %p308_p2 = pnand %p306_p1, %p303_p0 }
  0x7c   :  { %311 = shalt.err (!%p308_p2)
}
  0x7d   :  { %113 = dma.vmem_to_hbm [thread:$0]  %s111_s8, 64, %s442_s2, [#allocation7]  }
  0x7e   :  { %322 = dma.done.wait [#allocation7], 64  }
  0x7f   :  { %323 = vsyncadd [#allocation7], 4294967232 }
  0x80   :  { %117 = vsyncpa [#allocation7], 1 }
  0x81   :  { %118 = vsyncmov [#allocation3] }
  0x84   :  { %s119_s25 = vpop.sfrf %118 }
  0x85   :  { %p168_p3 = scmp.ne.s32.totalorder %s119_s25, 0 }
  0x87   :  { %123 = shalt.err (%p168_p3)  }
  0x88   :  { %125 = vsyncmov [#allocation3 + $0x1] }
  0x8b   :  { %s126_s26 = vpop.sfrf %125 }
  0x8c   :  { %p169_p4 = scmp.ne.s32.totalorder %s126_s26, 0 }
  0x8e   :  { %130 = shalt.err (%p169_p4)  }
  0x8f   :  { %132 = vsyncmov [#allocation3 + $0x2] }
  0x92   :  { %s133_s28 = vpop.sfrf %132 }
  0x93   :  { %p170_p5 = scmp.ne.s32.totalorder %s133_s28, 0 }
  0x95   :  { %137 = shalt.err (%p170_p5)  }
  0x96   :  { %139 = vsyncmov [#allocation3 + $0x3] }
  0x99   :  { %s140_s29 = vpop.sfrf %139 }
  0x9a   :  { %p171_p6 = scmp.ne.s32.totalorder %s140_s29, 0 }
  0x9c   :  { %144 = shalt.err (%p171_p6)  }

</bundles_post_ra>
